<compile_context>
chip_gen: v7x
topology: tpu7x:2x2x1
jax: 0.10.0
libtpu: 0.0.40
codegen_flags: <defaults>
</compile_context>

<pallas_src>
import jax
import jax.numpy as jnp
from jax.experimental import pallas as pl
from jax.experimental.pallas import tpu as pltpu

# ---- model hyper-parameters (small, TPU-friendly) --------------------------
BATCH = 8
LATENT_SIZE = 32
HIDDEN_SIZE = 128
OUTPUT_SIZE = 64
CONDITION_SIZE = 32
NUM_SPEAKERS = 4
NUM_LAYERS = 3
DATA_DROPOUT_P = 0.5   # irrelevant in eval mode
LN_EPS = 1e-5

# ---- packed f32 "vector slab" row layout (each row = 128 lanes) ------------
B1_ROW = 0
BC_ROW = 1
BL_ROW = 2                              # NUM_LAYERS rows
LNW_ROW = BL_ROW + NUM_LAYERS           # NUM_LAYERS + 1 rows
LNB_ROW = LNW_ROW + NUM_LAYERS + 1      # NUM_LAYERS + 1 rows
B2_ROW = LNB_ROW + NUM_LAYERS + 1       # 1 row (zero-padded to 128)
EMB_ROW = 16                            # sublane-tile aligned; NUM_SPEAKERS+1 rows
SLAB_ROWS = ((EMB_ROW + NUM_SPEAKERS + 1 + 7) // 8) * 8   # -> 24


def _layer_norm(x, w, b):
    """LayerNorm over the last axis with learnable affine params (eps=1e-5)."""
    mu = jnp.mean(x, axis=-1, keepdims=True)
    var = jnp.mean((x - mu) * (x - mu), axis=-1, keepdims=True)
    return (x - mu) * jax.lax.rsqrt(var + LN_EPS) * w + b


def decoder_kernel(zc_ref, spk_ref, w12_ref, wstack_ref, vslab_ref, out_ref):
    f32 = jnp.float32
    bf16 = jnp.bfloat16

    def row(r):
        return vslab_ref[r:r + 1, :]        # (1, 128) f32 view of the slab

    # --- fused fc1 + condition_layer: [z | cond] @ [[w1,0],[0,wc]] -> (B, 256)
    p = jnp.dot(zc_ref[...].astype(bf16), w12_ref[...],
                preferred_element_type=f32)
    h = (jnp.maximum(p[:, :HIDDEN_SIZE] + row(B1_ROW), 0.0)
         + jnp.maximum(p[:, HIDDEN_SIZE:] + row(BC_ROW), 0.0))

    # --- speaker embedding gather in-kernel (exact select over 5 table rows)
    spk = spk_ref[...]                      # (B, 1) int32
    for k in range(NUM_SPEAKERS + 1):
        h = h + jnp.where(spk == k, row(EMB_ROW + k), 0.0)

    # --- residual Linear -> LayerNorm -> ReLU blocks (statically unrolled)
    for i in range(NUM_LAYERS):
        y = jnp.dot(h.astype(bf16), wstack_ref[i],
                    preferred_element_type=f32) + row(BL_ROW + i)
        y = _layer_norm(y, row(LNW_ROW + i), row(LNB_ROW + i))
        h = h + jnp.maximum(y, 0.0)

    # --- output = fc2(layer_norms[-1](hidden)); lane-dense 128-wide store
    hn = _layer_norm(h, row(LNW_ROW + NUM_LAYERS), row(LNB_ROW + NUM_LAYERS))
    out_ref[...] = jnp.dot(hn.astype(bf16), wstack_ref[NUM_LAYERS],
                           preferred_element_type=f32) + row(B2_ROW)


def init_raw_params(key):
    ks = jax.random.split(key, 8)
    scale = 0.05
    return {
        "w1": scale * jax.random.normal(ks[0], (LATENT_SIZE, HIDDEN_SIZE), jnp.float32),
        "b1": scale * jax.random.normal(ks[1], (HIDDEN_SIZE,), jnp.float32),
        "wc": scale * jax.random.normal(ks[2], (CONDITION_SIZE, HIDDEN_SIZE), jnp.float32),
        "bc": scale * jax.random.normal(ks[3], (HIDDEN_SIZE,), jnp.float32),
        "emb": scale * jax.random.normal(ks[4], (NUM_SPEAKERS + 1, HIDDEN_SIZE), jnp.float32),
        "wl": scale * jax.random.normal(ks[5], (NUM_LAYERS, HIDDEN_SIZE, HIDDEN_SIZE), jnp.float32),
        "bl": scale * jax.random.normal(ks[6], (NUM_LAYERS, HIDDEN_SIZE), jnp.float32),
        "lnw": jnp.ones((NUM_LAYERS + 1, HIDDEN_SIZE), jnp.float32),
        "lnb": jnp.zeros((NUM_LAYERS + 1, HIDDEN_SIZE), jnp.float32),
        "w2": scale * jax.random.normal(ks[7], (HIDDEN_SIZE, OUTPUT_SIZE), jnp.float32),
        "b2": jnp.zeros((OUTPUT_SIZE,), jnp.float32),
    }


def pack_params(raw):
    """Pack raw per-layer params into the 3 kernel inputs (2 bf16 + 1 f32 slab)."""
    # Block-diagonal fused input weight: (LATENT+COND, 2*HIDDEN) in bf16.
    w12 = jnp.zeros((LATENT_SIZE + CONDITION_SIZE, 2 * HIDDEN_SIZE), jnp.float32)
    w12 = w12.at[:LATENT_SIZE, :HIDDEN_SIZE].set(raw["w1"])
    w12 = w12.at[LATENT_SIZE:, HIDDEN_SIZE:].set(raw["wc"])
    w12 = w12.astype(jnp.bfloat16)

    # Hidden-layer weights + zero-padded fc2 stacked: (NUM_LAYERS+1, 128, 128) bf16.
    w2p = jnp.zeros((HIDDEN_SIZE, HIDDEN_SIZE), jnp.float32)
    w2p = w2p.at[:, :OUTPUT_SIZE].set(raw["w2"])
    wstack = jnp.concatenate([raw["wl"], w2p[None]], axis=0).astype(jnp.bfloat16)

    # f32 vector slab: biases, LayerNorm params, padded b2, embedding table.
    b2p = jnp.zeros((1, HIDDEN_SIZE), jnp.float32).at[0, :OUTPUT_SIZE].set(raw["b2"])
    rows = jnp.concatenate(
        [raw["b1"][None, :], raw["bc"][None, :], raw["bl"],
         raw["lnw"], raw["lnb"], b2p], axis=0)          # (B2_ROW + 1, 128)
    vslab = jnp.zeros((SLAB_ROWS, HIDDEN_SIZE), jnp.float32)
    vslab = vslab.at[:rows.shape[0]].set(rows)
    vslab = vslab.at[EMB_ROW:EMB_ROW + NUM_SPEAKERS + 1].set(raw["emb"])

    return {"w12": w12, "wstack": wstack, "vslab": vslab}


@jax.jit
def decoder_forward(params, z, condition, speaker):
    """Eval-mode Decoder.forward(z, condition, speaker)."""
    zc = jnp.concatenate([z, condition], axis=-1)        # (B, 64) fused input
    spk = speaker.astype(jnp.int32).reshape(-1, 1)       # (B, 1) ids for in-kernel gather

    vmem = pl.BlockSpec(memory_space=pltpu.MemorySpace.VMEM)
    out128 = pl.pallas_call(
        decoder_kernel,
        out_shape=jax.ShapeDtypeStruct((z.shape[0], HIDDEN_SIZE), jnp.float32),
        in_specs=[vmem] * 5,
        out_specs=vmem,
    )(zc, spk, params["w12"], params["wstack"], params["vslab"])
    return out128[:, :OUTPUT_SIZE]                       # drop lane padding


def decoder_forward_ref(raw, z, condition, speaker):
    """Pure-JAX reference mirroring the kernel's bf16-weight / f32-accum dots."""
    bf16 = jnp.bfloat16

    def mm(x, w):
        return jnp.dot(x.astype(bf16), w.astype(bf16),
                       preferred_element_type=jnp.float32)

    h = jax.nn.relu(mm(z, raw["w1"]) + raw["b1"])
    h = h + jax.nn.relu(mm(condition, raw["wc"]) + raw["bc"])
    h = h + raw["emb"][speaker]
    for i in range(NUM_LAYERS):
        y = mm(h, raw["wl"][i]) + raw["bl"][i]
        y = _layer_norm(y, raw["lnw"][i], raw["lnb"][i])
        h = h + jax.nn.relu(y)
    hn = _layer_norm(h, raw["lnw"][NUM_LAYERS], raw["lnb"][NUM_LAYERS])
    return mm(hn, raw["w2"]) + raw["b2"]


if __name__ == "__main__":
    key = jax.random.PRNGKey(0)
    k_param, k_z, k_c, k_s = jax.random.split(key, 4)

    raw = init_raw_params(k_param)
    params = pack_params(raw)

    z = jax.random.normal(k_z, (BATCH, LATENT_SIZE), jnp.float32)
    condition = jax.random.normal(k_c, (BATCH, CONDITION_SIZE), jnp.float32)
    speaker = jax.random.randint(k_s, (BATCH,), 0, NUM_SPEAKERS, jnp.int32)

    out = decoder_forward(params, z, condition, speaker)
    out = jax.block_until_ready(out)

    ref = decoder_forward_ref(raw, z, condition, speaker)
    assert out.shape == (BATCH, OUTPUT_SIZE)
    max_err = jnp.max(jnp.abs(out - ref))
    assert jnp.allclose(out, ref, atol=5e-3, rtol=5e-3), (
        f"max abs err = {max_err}")

    print("KERNEL_OK")
</pallas_src>

<mosaic_0001>
module attributes {stable_mosaic.version = 11 : i64} {
  func.func @decoder_kernel(%arg0: memref<8x64xf32, #tpu.memory_space<vmem>>, %arg1: memref<8x1xi32, #tpu.memory_space<vmem>>, %arg2: memref<64x256xbf16, #tpu.memory_space<vmem>>, %arg3: memref<4x128x128xbf16, #tpu.memory_space<vmem>>, %arg4: memref<24x128xf32, #tpu.memory_space<vmem>>, %arg5: memref<8x128xf32, #tpu.memory_space<vmem>>) attributes {dimension_semantics = [], scalar_prefetch = 0 : i64, scratch_operands = 0 : i64, tpu.core_type = #tpu.core_type<tc>} {
    %c0 = arith.constant 0 : index
    %c0_0 = arith.constant 0 : index
    %0 = vector.load %arg0[%c0, %c0_0] : memref<8x64xf32, #tpu.memory_space<vmem>>, vector<8x64xf32>
    %1 = arith.truncf %0 : vector<8x64xf32> to vector<8x64xbf16>
    %c0_1 = arith.constant 0 : index
    %c0_2 = arith.constant 0 : index
    %2 = vector.load %arg2[%c0_1, %c0_2] : memref<64x256xbf16, #tpu.memory_space<vmem>>, vector<64x256xbf16>
    %cst = arith.constant dense<0.000000e+00> : vector<8x256xf32>
    %3 = tpu.matmul %1, %2, %cst {dimension_numbers = #tpu.dot_dimension_numbers<[1], [0], [0], [1], [0, 0, 1, 1], [], []>} : vector<8x64xbf16>, vector<64x256xbf16>, vector<8x256xf32> -> vector<8x256xf32>
    %4 = vector.extract_strided_slice %3 {offsets = [0, 0], sizes = [8, 128], strides = [1, 1]} : vector<8x256xf32> to vector<8x128xf32>
    %c0_3 = arith.constant 0 : index
    %c0_4 = arith.constant 0 : index
    %5 = vector.load %arg4[%c0_3, %c0_4] : memref<24x128xf32, #tpu.memory_space<vmem>>, vector<1x128xf32>
    %6 = vector.broadcast %5 : vector<1x128xf32> to vector<8x128xf32>
    %7 = arith.addf %4, %6 : vector<8x128xf32>
    %cst_5 = arith.constant 0.000000e+00 : f32
    %8 = vector.broadcast %cst_5 : f32 to vector<8x128xf32>
    %9 = arith.maximumf %7, %8 : vector<8x128xf32>
    %10 = vector.extract_strided_slice %3 {offsets = [0, 128], sizes = [8, 128], strides = [1, 1]} : vector<8x256xf32> to vector<8x128xf32>
    %c1 = arith.constant 1 : index
    %c0_6 = arith.constant 0 : index
    %11 = vector.load %arg4[%c1, %c0_6] : memref<24x128xf32, #tpu.memory_space<vmem>>, vector<1x128xf32>
    %12 = vector.broadcast %11 : vector<1x128xf32> to vector<8x128xf32>
    %13 = arith.addf %10, %12 : vector<8x128xf32>
    %cst_7 = arith.constant 0.000000e+00 : f32
    %14 = vector.broadcast %cst_7 : f32 to vector<8x128xf32>
    %15 = arith.maximumf %13, %14 : vector<8x128xf32>
    %16 = arith.addf %9, %15 : vector<8x128xf32>
    %c0_8 = arith.constant 0 : index
    %c0_9 = arith.constant 0 : index
    %17 = vector.load %arg1[%c0_8, %c0_9] : memref<8x1xi32, #tpu.memory_space<vmem>>, vector<8x1xi32>
    %c0_i32 = arith.constant 0 : i32
    %18 = vector.broadcast %c0_i32 : i32 to vector<8x1xi32>
    %19 = arith.cmpi eq, %17, %18 : vector<8x1xi32>
    %c16 = arith.constant 16 : index
    %c0_10 = arith.constant 0 : index
    %20 = vector.load %arg4[%c16, %c0_10] : memref<24x128xf32, #tpu.memory_space<vmem>>, vector<1x128xf32>
    %cst_11 = arith.constant 0.000000e+00 : f32
    %21 = vector.shape_cast %19 : vector<8x1xi1> to vector<8x1xi1>
    %22 = vector.broadcast %21 : vector<8x1xi1> to vector<8x128xi1>
    %23 = vector.shape_cast %20 : vector<1x128xf32> to vector<1x128xf32>
    %24 = vector.broadcast %23 : vector<1x128xf32> to vector<8x128xf32>
    %25 = vector.broadcast %cst_11 : f32 to vector<8x128xf32>
    %26 = arith.select %22, %24, %25 : vector<8x128xi1>, vector<8x128xf32>
    %27 = arith.addf %16, %26 : vector<8x128xf32>
    %c1_i32 = arith.constant 1 : i32
    %28 = vector.broadcast %c1_i32 : i32 to vector<8x1xi32>
    %29 = arith.cmpi eq, %17, %28 : vector<8x1xi32>
    %c17 = arith.constant 17 : index
    %c0_12 = arith.constant 0 : index
    %30 = vector.load %arg4[%c17, %c0_12] : memref<24x128xf32, #tpu.memory_space<vmem>>, vector<1x128xf32>
    %cst_13 = arith.constant 0.000000e+00 : f32
    %31 = vector.shape_cast %29 : vector<8x1xi1> to vector<8x1xi1>
    %32 = vector.broadcast %31 : vector<8x1xi1> to vector<8x128xi1>
    %33 = vector.shape_cast %30 : vector<1x128xf32> to vector<1x128xf32>
    %34 = vector.broadcast %33 : vector<1x128xf32> to vector<8x128xf32>
    %35 = vector.broadcast %cst_13 : f32 to vector<8x128xf32>
    %36 = arith.select %32, %34, %35 : vector<8x128xi1>, vector<8x128xf32>
    %37 = arith.addf %27, %36 : vector<8x128xf32>
    %c2_i32 = arith.constant 2 : i32
    %38 = vector.broadcast %c2_i32 : i32 to vector<8x1xi32>
    %39 = arith.cmpi eq, %17, %38 : vector<8x1xi32>
    %c18 = arith.constant 18 : index
    %c0_14 = arith.constant 0 : index
    %40 = vector.load %arg4[%c18, %c0_14] : memref<24x128xf32, #tpu.memory_space<vmem>>, vector<1x128xf32>
    %cst_15 = arith.constant 0.000000e+00 : f32
    %41 = vector.shape_cast %39 : vector<8x1xi1> to vector<8x1xi1>
    %42 = vector.broadcast %41 : vector<8x1xi1> to vector<8x128xi1>
    %43 = vector.shape_cast %40 : vector<1x128xf32> to vector<1x128xf32>
    %44 = vector.broadcast %43 : vector<1x128xf32> to vector<8x128xf32>
    %45 = vector.broadcast %cst_15 : f32 to vector<8x128xf32>
    %46 = arith.select %42, %44, %45 : vector<8x128xi1>, vector<8x128xf32>
    %47 = arith.addf %37, %46 : vector<8x128xf32>
    %c3_i32 = arith.constant 3 : i32
    %48 = vector.broadcast %c3_i32 : i32 to vector<8x1xi32>
    %49 = arith.cmpi eq, %17, %48 : vector<8x1xi32>
    %c19 = arith.constant 19 : index
    %c0_16 = arith.constant 0 : index
    %50 = vector.load %arg4[%c19, %c0_16] : memref<24x128xf32, #tpu.memory_space<vmem>>, vector<1x128xf32>
    %cst_17 = arith.constant 0.000000e+00 : f32
    %51 = vector.shape_cast %49 : vector<8x1xi1> to vector<8x1xi1>
    %52 = vector.broadcast %51 : vector<8x1xi1> to vector<8x128xi1>
    %53 = vector.shape_cast %50 : vector<1x128xf32> to vector<1x128xf32>
    %54 = vector.broadcast %53 : vector<1x128xf32> to vector<8x128xf32>
    %55 = vector.broadcast %cst_17 : f32 to vector<8x128xf32>
    %56 = arith.select %52, %54, %55 : vector<8x128xi1>, vector<8x128xf32>
    %57 = arith.addf %47, %56 : vector<8x128xf32>
    %c4_i32 = arith.constant 4 : i32
    %58 = vector.broadcast %c4_i32 : i32 to vector<8x1xi32>
    %59 = arith.cmpi eq, %17, %58 : vector<8x1xi32>
    %c20 = arith.constant 20 : index
    %c0_18 = arith.constant 0 : index
    %60 = vector.load %arg4[%c20, %c0_18] : memref<24x128xf32, #tpu.memory_space<vmem>>, vector<1x128xf32>
    %cst_19 = arith.constant 0.000000e+00 : f32
    %61 = vector.shape_cast %59 : vector<8x1xi1> to vector<8x1xi1>
    %62 = vector.broadcast %61 : vector<8x1xi1> to vector<8x128xi1>
    %63 = vector.shape_cast %60 : vector<1x128xf32> to vector<1x128xf32>
    %64 = vector.broadcast %63 : vector<1x128xf32> to vector<8x128xf32>
    %65 = vector.broadcast %cst_19 : f32 to vector<8x128xf32>
    %66 = arith.select %62, %64, %65 : vector<8x128xi1>, vector<8x128xf32>
    %67 = arith.addf %57, %66 : vector<8x128xf32>
    %68 = arith.truncf %67 : vector<8x128xf32> to vector<8x128xbf16>
    %c0_20 = arith.constant 0 : index
    %c0_21 = arith.constant 0 : index
    %c0_22 = arith.constant 0 : index
    %69 = vector.load %arg3[%c0_20, %c0_21, %c0_22] : memref<4x128x128xbf16, #tpu.memory_space<vmem>>, vector<1x128x128xbf16>
    %70 = vector.shape_cast %69 : vector<1x128x128xbf16> to vector<128x128xbf16>
    %cst_23 = arith.constant dense<0.000000e+00> : vector<8x128xf32>
    %71 = tpu.matmul %68, %70, %cst_23 {dimension_numbers = #tpu.dot_dimension_numbers<[1], [0], [0], [1], [0, 0, 1, 1], [], []>} : vector<8x128xbf16>, vector<128x128xbf16>, vector<8x128xf32> -> vector<8x128xf32>
    %c2 = arith.constant 2 : index
    %c0_24 = arith.constant 0 : index
    %72 = vector.load %arg4[%c2, %c0_24] : memref<24x128xf32, #tpu.memory_space<vmem>>, vector<1x128xf32>
    %73 = vector.broadcast %72 : vector<1x128xf32> to vector<8x128xf32>
    %74 = arith.addf %71, %73 : vector<8x128xf32>
    %c5 = arith.constant 5 : index
    %c0_25 = arith.constant 0 : index
    %75 = vector.load %arg4[%c5, %c0_25] : memref<24x128xf32, #tpu.memory_space<vmem>>, vector<1x128xf32>
    %c9 = arith.constant 9 : index
    %c0_26 = arith.constant 0 : index
    %76 = vector.load %arg4[%c9, %c0_26] : memref<24x128xf32, #tpu.memory_space<vmem>>, vector<1x128xf32>
    %cst_27 = arith.constant dense<0.000000e+00> : vector<8xf32>
    %77 = vector.multi_reduction <add>, %74, %cst_27 [1] : vector<8x128xf32> to vector<8xf32>
    %78 = vector.shape_cast %77 : vector<8xf32> to vector<8x1xf32>
    %cst_28 = arith.constant 1.280000e+02 : f32
    %79 = vector.broadcast %cst_28 : f32 to vector<8x1xf32>
    %80 = arith.divf %78, %79 : vector<8x1xf32>
    %81 = vector.broadcast %80 : vector<8x1xf32> to vector<8x128xf32>
    %82 = arith.subf %74, %81 : vector<8x128xf32>
    %83 = vector.broadcast %80 : vector<8x1xf32> to vector<8x128xf32>
    %84 = arith.subf %74, %83 : vector<8x128xf32>
    %85 = arith.mulf %82, %84 : vector<8x128xf32>
    %cst_29 = arith.constant dense<0.000000e+00> : vector<8xf32>
    %86 = vector.multi_reduction <add>, %85, %cst_29 [1] : vector<8x128xf32> to vector<8xf32>
    %87 = vector.shape_cast %86 : vector<8xf32> to vector<8x1xf32>
    %cst_30 = arith.constant 1.280000e+02 : f32
    %88 = vector.broadcast %cst_30 : f32 to vector<8x1xf32>
    %89 = arith.divf %87, %88 : vector<8x1xf32>
    %90 = vector.broadcast %80 : vector<8x1xf32> to vector<8x128xf32>
    %91 = arith.subf %74, %90 : vector<8x128xf32>
    %cst_31 = arith.constant 9.99999974E-6 : f32
    %92 = vector.broadcast %cst_31 : f32 to vector<8x1xf32>
    %93 = arith.addf %89, %92 : vector<8x1xf32>
    %94 = math.rsqrt %93 : vector<8x1xf32>
    %95 = vector.broadcast %94 : vector<8x1xf32> to vector<8x128xf32>
    %96 = arith.mulf %91, %95 : vector<8x128xf32>
    %97 = vector.broadcast %75 : vector<1x128xf32> to vector<8x128xf32>
    %98 = arith.mulf %96, %97 : vector<8x128xf32>
    %99 = vector.broadcast %76 : vector<1x128xf32> to vector<8x128xf32>
    %100 = arith.addf %98, %99 : vector<8x128xf32>
    %cst_32 = arith.constant 0.000000e+00 : f32
    %101 = vector.broadcast %cst_32 : f32 to vector<8x128xf32>
    %102 = arith.maximumf %100, %101 : vector<8x128xf32>
    %103 = arith.addf %67, %102 : vector<8x128xf32>
    %104 = arith.truncf %103 : vector<8x128xf32> to vector<8x128xbf16>
    %c1_33 = arith.constant 1 : index
    %c0_34 = arith.constant 0 : index
    %c0_35 = arith.constant 0 : index
    %105 = vector.load %arg3[%c1_33, %c0_34, %c0_35] : memref<4x128x128xbf16, #tpu.memory_space<vmem>>, vector<1x128x128xbf16>
    %106 = vector.shape_cast %105 : vector<1x128x128xbf16> to vector<128x128xbf16>
    %cst_36 = arith.constant dense<0.000000e+00> : vector<8x128xf32>
    %107 = tpu.matmul %104, %106, %cst_36 {dimension_numbers = #tpu.dot_dimension_numbers<[1], [0], [0], [1], [0, 0, 1, 1], [], []>} : vector<8x128xbf16>, vector<128x128xbf16>, vector<8x128xf32> -> vector<8x128xf32>
    %c3 = arith.constant 3 : index
    %c0_37 = arith.constant 0 : index
    %108 = vector.load %arg4[%c3, %c0_37] : memref<24x128xf32, #tpu.memory_space<vmem>>, vector<1x128xf32>
    %109 = vector.broadcast %108 : vector<1x128xf32> to vector<8x128xf32>
    %110 = arith.addf %107, %109 : vector<8x128xf32>
    %c6 = arith.constant 6 : index
    %c0_38 = arith.constant 0 : index
    %111 = vector.load %arg4[%c6, %c0_38] : memref<24x128xf32, #tpu.memory_space<vmem>>, vector<1x128xf32>
    %c10 = arith.constant 10 : index
    %c0_39 = arith.constant 0 : index
    %112 = vector.load %arg4[%c10, %c0_39] : memref<24x128xf32, #tpu.memory_space<vmem>>, vector<1x128xf32>
    %cst_40 = arith.constant dense<0.000000e+00> : vector<8xf32>
    %113 = vector.multi_reduction <add>, %110, %cst_40 [1] : vector<8x128xf32> to vector<8xf32>
    %114 = vector.shape_cast %113 : vector<8xf32> to vector<8x1xf32>
    %cst_41 = arith.constant 1.280000e+02 : f32
    %115 = vector.broadcast %cst_41 : f32 to vector<8x1xf32>
    %116 = arith.divf %114, %115 : vector<8x1xf32>
    %117 = vector.broadcast %116 : vector<8x1xf32> to vector<8x128xf32>
    %118 = arith.subf %110, %117 : vector<8x128xf32>
    %119 = vector.broadcast %116 : vector<8x1xf32> to vector<8x128xf32>
    %120 = arith.subf %110, %119 : vector<8x128xf32>
    %121 = arith.mulf %118, %120 : vector<8x128xf32>
    %cst_42 = arith.constant dense<0.000000e+00> : vector<8xf32>
    %122 = vector.multi_reduction <add>, %121, %cst_42 [1] : vector<8x128xf32> to vector<8xf32>
    %123 = vector.shape_cast %122 : vector<8xf32> to vector<8x1xf32>
    %cst_43 = arith.constant 1.280000e+02 : f32
    %124 = vector.broadcast %cst_43 : f32 to vector<8x1xf32>
    %125 = arith.divf %123, %124 : vector<8x1xf32>
    %126 = vector.broadcast %116 : vector<8x1xf32> to vector<8x128xf32>
    %127 = arith.subf %110, %126 : vector<8x128xf32>
    %cst_44 = arith.constant 9.99999974E-6 : f32
    %128 = vector.broadcast %cst_44 : f32 to vector<8x1xf32>
    %129 = arith.addf %125, %128 : vector<8x1xf32>
    %130 = math.rsqrt %129 : vector<8x1xf32>
    %131 = vector.broadcast %130 : vector<8x1xf32> to vector<8x128xf32>
    %132 = arith.mulf %127, %131 : vector<8x128xf32>
    %133 = vector.broadcast %111 : vector<1x128xf32> to vector<8x128xf32>
    %134 = arith.mulf %132, %133 : vector<8x128xf32>
    %135 = vector.broadcast %112 : vector<1x128xf32> to vector<8x128xf32>
    %136 = arith.addf %134, %135 : vector<8x128xf32>
    %cst_45 = arith.constant 0.000000e+00 : f32
    %137 = vector.broadcast %cst_45 : f32 to vector<8x128xf32>
    %138 = arith.maximumf %136, %137 : vector<8x128xf32>
    %139 = arith.addf %103, %138 : vector<8x128xf32>
    %140 = arith.truncf %139 : vector<8x128xf32> to vector<8x128xbf16>
    %c2_46 = arith.constant 2 : index
    %c0_47 = arith.constant 0 : index
    %c0_48 = arith.constant 0 : index
    %141 = vector.load %arg3[%c2_46, %c0_47, %c0_48] : memref<4x128x128xbf16, #tpu.memory_space<vmem>>, vector<1x128x128xbf16>
    %142 = vector.shape_cast %141 : vector<1x128x128xbf16> to vector<128x128xbf16>
    %cst_49 = arith.constant dense<0.000000e+00> : vector<8x128xf32>
    %143 = tpu.matmul %140, %142, %cst_49 {dimension_numbers = #tpu.dot_dimension_numbers<[1], [0], [0], [1], [0, 0, 1, 1], [], []>} : vector<8x128xbf16>, vector<128x128xbf16>, vector<8x128xf32> -> vector<8x128xf32>
    %c4 = arith.constant 4 : index
    %c0_50 = arith.constant 0 : index
    %144 = vector.load %arg4[%c4, %c0_50] : memref<24x128xf32, #tpu.memory_space<vmem>>, vector<1x128xf32>
    %145 = vector.broadcast %144 : vector<1x128xf32> to vector<8x128xf32>
    %146 = arith.addf %143, %145 : vector<8x128xf32>
    %c7 = arith.constant 7 : index
    %c0_51 = arith.constant 0 : index
    %147 = vector.load %arg4[%c7, %c0_51] : memref<24x128xf32, #tpu.memory_space<vmem>>, vector<1x128xf32>
    %c11 = arith.constant 11 : index
    %c0_52 = arith.constant 0 : index
    %148 = vector.load %arg4[%c11, %c0_52] : memref<24x128xf32, #tpu.memory_space<vmem>>, vector<1x128xf32>
    %cst_53 = arith.constant dense<0.000000e+00> : vector<8xf32>
    %149 = vector.multi_reduction <add>, %146, %cst_53 [1] : vector<8x128xf32> to vector<8xf32>
    %150 = vector.shape_cast %149 : vector<8xf32> to vector<8x1xf32>
    %cst_54 = arith.constant 1.280000e+02 : f32
    %151 = vector.broadcast %cst_54 : f32 to vector<8x1xf32>
    %152 = arith.divf %150, %151 : vector<8x1xf32>
    %153 = vector.broadcast %152 : vector<8x1xf32> to vector<8x128xf32>
    %154 = arith.subf %146, %153 : vector<8x128xf32>
    %155 = vector.broadcast %152 : vector<8x1xf32> to vector<8x128xf32>
    %156 = arith.subf %146, %155 : vector<8x128xf32>
    %157 = arith.mulf %154, %156 : vector<8x128xf32>
    %cst_55 = arith.constant dense<0.000000e+00> : vector<8xf32>
    %158 = vector.multi_reduction <add>, %157, %cst_55 [1] : vector<8x128xf32> to vector<8xf32>
    %159 = vector.shape_cast %158 : vector<8xf32> to vector<8x1xf32>
    %cst_56 = arith.constant 1.280000e+02 : f32
    %160 = vector.broadcast %cst_56 : f32 to vector<8x1xf32>
    %161 = arith.divf %159, %160 : vector<8x1xf32>
    %162 = vector.broadcast %152 : vector<8x1xf32> to vector<8x128xf32>
    %163 = arith.subf %146, %162 : vector<8x128xf32>
    %cst_57 = arith.constant 9.99999974E-6 : f32
    %164 = vector.broadcast %cst_57 : f32 to vector<8x1xf32>
    %165 = arith.addf %161, %164 : vector<8x1xf32>
    %166 = math.rsqrt %165 : vector<8x1xf32>
    %167 = vector.broadcast %166 : vector<8x1xf32> to vector<8x128xf32>
    %168 = arith.mulf %163, %167 : vector<8x128xf32>
    %169 = vector.broadcast %147 : vector<1x128xf32> to vector<8x128xf32>
    %170 = arith.mulf %168, %169 : vector<8x128xf32>
    %171 = vector.broadcast %148 : vector<1x128xf32> to vector<8x128xf32>
    %172 = arith.addf %170, %171 : vector<8x128xf32>
    %cst_58 = arith.constant 0.000000e+00 : f32
    %173 = vector.broadcast %cst_58 : f32 to vector<8x128xf32>
    %174 = arith.maximumf %172, %173 : vector<8x128xf32>
    %175 = arith.addf %139, %174 : vector<8x128xf32>
    %c8 = arith.constant 8 : index
    %c0_59 = arith.constant 0 : index
    %176 = vector.load %arg4[%c8, %c0_59] : memref<24x128xf32, #tpu.memory_space<vmem>>, vector<1x128xf32>
    %c12 = arith.constant 12 : index
    %c0_60 = arith.constant 0 : index
    %177 = vector.load %arg4[%c12, %c0_60] : memref<24x128xf32, #tpu.memory_space<vmem>>, vector<1x128xf32>
    %cst_61 = arith.constant dense<0.000000e+00> : vector<8xf32>
    %178 = vector.multi_reduction <add>, %175, %cst_61 [1] : vector<8x128xf32> to vector<8xf32>
    %179 = vector.shape_cast %178 : vector<8xf32> to vector<8x1xf32>
    %cst_62 = arith.constant 1.280000e+02 : f32
    %180 = vector.broadcast %cst_62 : f32 to vector<8x1xf32>
    %181 = arith.divf %179, %180 : vector<8x1xf32>
    %182 = vector.broadcast %181 : vector<8x1xf32> to vector<8x128xf32>
    %183 = arith.subf %175, %182 : vector<8x128xf32>
    %184 = vector.broadcast %181 : vector<8x1xf32> to vector<8x128xf32>
    %185 = arith.subf %175, %184 : vector<8x128xf32>
    %186 = arith.mulf %183, %185 : vector<8x128xf32>
    %cst_63 = arith.constant dense<0.000000e+00> : vector<8xf32>
    %187 = vector.multi_reduction <add>, %186, %cst_63 [1] : vector<8x128xf32> to vector<8xf32>
    %188 = vector.shape_cast %187 : vector<8xf32> to vector<8x1xf32>
    %cst_64 = arith.constant 1.280000e+02 : f32
    %189 = vector.broadcast %cst_64 : f32 to vector<8x1xf32>
    %190 = arith.divf %188, %189 : vector<8x1xf32>
    %191 = vector.broadcast %181 : vector<8x1xf32> to vector<8x128xf32>
    %192 = arith.subf %175, %191 : vector<8x128xf32>
    %cst_65 = arith.constant 9.99999974E-6 : f32
    %193 = vector.broadcast %cst_65 : f32 to vector<8x1xf32>
    %194 = arith.addf %190, %193 : vector<8x1xf32>
    %195 = math.rsqrt %194 : vector<8x1xf32>
    %196 = vector.broadcast %195 : vector<8x1xf32> to vector<8x128xf32>
    %197 = arith.mulf %192, %196 : vector<8x128xf32>
    %198 = vector.broadcast %176 : vector<1x128xf32> to vector<8x128xf32>
    %199 = arith.mulf %197, %198 : vector<8x128xf32>
    %200 = vector.broadcast %177 : vector<1x128xf32> to vector<8x128xf32>
    %201 = arith.addf %199, %200 : vector<8x128xf32>
    %202 = arith.truncf %201 : vector<8x128xf32> to vector<8x128xbf16>
    %c3_66 = arith.constant 3 : index
    %c0_67 = arith.constant 0 : index
    %c0_68 = arith.constant 0 : index
    %203 = vector.load %arg3[%c3_66, %c0_67, %c0_68] : memref<4x128x128xbf16, #tpu.memory_space<vmem>>, vector<1x128x128xbf16>
    %204 = vector.shape_cast %203 : vector<1x128x128xbf16> to vector<128x128xbf16>
    %cst_69 = arith.constant dense<0.000000e+00> : vector<8x128xf32>
    %205 = tpu.matmul %202, %204, %cst_69 {dimension_numbers = #tpu.dot_dimension_numbers<[1], [0], [0], [1], [0, 0, 1, 1], [], []>} : vector<8x128xbf16>, vector<128x128xbf16>, vector<8x128xf32> -> vector<8x128xf32>
    %c13 = arith.constant 13 : index
    %c0_70 = arith.constant 0 : index
    %206 = vector.load %arg4[%c13, %c0_70] : memref<24x128xf32, #tpu.memory_space<vmem>>, vector<1x128xf32>
    %207 = vector.broadcast %206 : vector<1x128xf32> to vector<8x128xf32>
    %208 = arith.addf %205, %207 : vector<8x128xf32>
    %c0_71 = arith.constant 0 : index
    %c0_72 = arith.constant 0 : index
    %209 = vector.load %arg5[%c0_71, %c0_72] : memref<8x128xf32, #tpu.memory_space<vmem>>, vector<8x128xf32>
    tpu.vector_store %arg5[%c0_71, %c0_72], %208 {strides = array<i32>} : memref<8x128xf32, #tpu.memory_space<vmem>>, vector<8x128xf32>,
    return
  }
}

</mosaic_0001>

<bundles_post_ra>
// kernel: decoder_forward.1
= control target key start
LH: loop header
LB: loop body
LE: loop exit
PB: predicated region body
PF: predicated region fallthrough
CT: control target
= control target key end

     0   :  { %10 = vsyncpa [#allocation3], 0  ;;  %s1277_s0 = inlined_call_operand.vmem [shape: f32[8,64], index: 0, kind: input, shape index: {}]   ;;  %s1278_s1 = inlined_call_operand.vmem [shape: s32[8,1], index: 1, kind: input, shape index: {}]   ;;  %s1279_s2 = inlined_call_operand.hbm [shape: bf16[64,256], index: 2, kind: input, shape index: {}]   ;;  %s1280_s3 = inlined_call_operand.hbm [shape: bf16[4,128,128], index: 3, kind: input, shape index: {}]   ;;  %s1281_s4 = inlined_call_operand.vmem [shape: f32[24,128], index: 4, kind: input, shape index: {}]   ;;  %s1282_s5 = inlined_call_operand.hbm [shape: f32[8,128], index: 5, kind: output, shape index: {}]  }
   0x1   :  { %11 = vsyncpa [#allocation6], 0 }
   0x2   :  { %12 = vsyncpa [#allocation4], 0  ;;  %s1097_s18 = smov [#allocation2]   ;;  %s1025_s22 = scalar_lea.hbm %s1279_s2, 1024 }
   0x3   :  { %s22_s19 = sshll.u32 %s1097_s18, 4  ;;  %p1026_p0 = scmp.ne.s32.totalorder %s1279_s2, %s1025_s22  ;;  %s23_s19 = int_to_ptr.vmem [resolvable:$true] %s22_s19 }
   0x4   :  { %p1029_p1 = scmp.lt.u32.totalorder %s1025_s22, %s1279_s2 }
   0x6   :  { %p1031_p2 = pnand %p1029_p1, %p1026_p0 }
   0x8   :  { %1034 = shalt.err (!%p1031_p2)
}
   0x9   :  { %s1035_s27 = scalar_lea.vmem %s23_s19, 1024  ;;  %p1040_p4 = scmp.lt.s32.totalorder %s23_s19, %s23_s19 }
   0xa   :  { %p1036_p3 = scmp.ne.s32.totalorder %s23_s19, %s1035_s27  ;;  %p1041_p5 = scmp.lt.s32.totalorder %s1035_s27, %s1035_s27 }
   0xc   :  { %p1042_p6 = por %p1041_p5, %p1040_p4 }
   0xe   :  { %p1043_p7 = pnand %p1042_p6, %p1036_p3 }
  0x10   :  { %1046 = shalt.err (!%p1043_p7)
}
  0x11   :  { %s1098_s28 = smov 128   ;;  %s1099_s29 = smov 8  }
  0x12   :  { %28 = dma.hbm_to_vmem [thread:$0]  %s1279_s2, 1024, %s23_s19, [#allocation3], %s1098_s28, %s1098_s28, %s1099_s29  }
  0x13   :  { %s1100_s7 = smov [#allocation5]   ;;  %s1047_s11 = scalar_lea.hbm %s1280_s3, 4096 }
  0x14   :  { %s34_s8 = sshll.u32 %s1100_s7, 4  ;;  %p1048_p8 = scmp.ne.s32.totalorder %s1280_s3, %s1047_s11  ;;  %s35_s8 = int_to_ptr.vmem [resolvable:$true] %s34_s8 }
  0x15   :  { %p1051_p9 = scmp.lt.u32.totalorder %s1047_s11, %s1280_s3 }
  0x17   :  { %p1053_p10 = pnand %p1051_p9, %p1048_p8 }
  0x19   :  { %1056 = shalt.err (!%p1053_p10)
}
  0x1a   :  { %s1057_s16 = scalar_lea.vmem %s35_s8, 4096  ;;  %p1062_p12 = scmp.lt.s32.totalorder %s35_s8, %s35_s8 }
  0x1b   :  { %p1058_p11 = scmp.ne.s32.totalorder %s35_s8, %s1057_s16  ;;  %p1063_p13 = scmp.lt.s32.totalorder %s1057_s16, %s1057_s16 }
  0x1d   :  { %p1064_p0 = por %p1063_p13, %p1062_p12 }
  0x1f   :  { %p1065_p1 = pnand %p1064_p0, %p1058_p11 }
  0x21   :  { %1068 = shalt.err (!%p1065_p1)
}
  0x22   :  { %s1101_s2 = smov 64   ;;  %s1102_s17 = smov 4  }
  0x23   :  { %40 = dma.hbm_to_vmem [thread:$0]  %s1280_s3, 4096, %s35_s8, [#allocation6], %s1101_s2, %s1101_s2, %s1102_s17  }
  0x24   :  { %1091 = dma.done.wait [#allocation3], 1024  }
  0x25   :  { %1092 = vsyncadd [#allocation3], 4294966272 }
  0x26   :  { %1093 = dma.done.wait [#allocation6], 4096  }
  0x27   :  { %1094 = vsyncadd [#allocation6], 4294963200  ;;  %v1103_v0 = vmov 0   ;;  %v1104_v1 = vmov 0.0   ;;  %v973_v2 = vld [vmem:[#allocation2 + $0x4] ss:$8 sps:$4 sm:$0xff]  }
  0x28   :  { %136 = vmatprep.mubr.bf16.mxu0 %v1103_v0  ;;  %971 = vset.pattern.permute.xlu0 %v1103_v0  ;;  %v975_v3 = vld [vmem:[#allocation2] ss:$8 sps:$4 sm:$0xff]   ;;  %v976_v4 = vld [vmem:[#allocation2 + $0x14] ss:$8 sps:$4 sm:$0xff]   ;;  %v978_v5 = vld [vmem:[#allocation2 + $0x10] ss:$8 sps:$4 sm:$0xff]  }
  0x29   :  { %972 = vset.pattern.permute.xlu1 %v1103_v0  ;;  %881 = vmatprep.subr.bf16.mxu1 %v1104_v1  ;;  %v979_v6 = vld [vmem:[#allocation2 + $0x24] ss:$8 sps:$4 sm:$0xff]   ;;  %v981_v7 = vld [vmem:[#allocation2 + $0x20] ss:$8 sps:$4 sm:$0xff]   ;;  %v982_v9 = vld [vmem:[#allocation2 + $0x34] ss:$8 sps:$4 sm:$0xff]  }
  0x2a   :  { %104 = vmatprep.subr.bf16.mxu0 %v973_v2  ;;  %v160_v8 = vld [vmem:[%s1278_s1] sm:$0xff]  ;;  %v984_v13 = vld [vmem:[#allocation2 + $0x30] ss:$8 sps:$4 sm:$0xff]   ;;  %v986_v15 = vld [vmem:[#allocation5 + $0x8] sm:$0xff]   ;;  %vm100_vm5 = vcmask 523264   ;;  %vm1105_vm6 = vmmov 0  }
  0x2b   :  { %105 = vmatpush1.bf16.msra.mxu0 %v975_v3  ;;  %vm161_vm0 = vcmp.eq.s32.totalorder %v160_v8, 0  ;;  %vm174_vm1 = vcmp.eq.s32.totalorder %v160_v8, 1  ;;  %vm187_vm2 = vcmp.eq.s32.totalorder %v160_v8, 2  ;;  %v985_v10 = vld [vmem:[#allocation5] sm:$0xff]   ;;  %vm213_vm3 = vcmp.eq.s32.totalorder %v160_v8, 4  ;;  %v987_v19 = vld [vmem:[#allocation5 + $0x10] sm:$0xff]   ;;  %897 = vmatprep.mubr.msk.bf16.mxu1 %vm1105_vm6, %v1104_v1 }
  0x2c   :  { %106 = vmatprep.subr.bf16.mxu0 %v976_v4  ;;  %v163_v11 = vsel %vm161_vm0, 1, %v1103_v0  ;;  %v189_v12 = vsel %vm187_vm2, 1, %v1103_v0  ;;  %vm200_vm4 = vcmp.eq.s32.totalorder %v160_v8, 3  ;;  %v176_v14 = vsel %vm174_vm1, 1, %v1103_v0  ;;  %882 = vmatpush3.bf16.msra.mxu1 %v985_v10  ;;  %v50_v16 = vld [vmem:[%s1277_s0] sm:$0xff]  ;;  %v988_v21 = vld [vmem:[#allocation5 + $0x18] sm:$0xff]  }
  0x2d   :  { %165 = vperm.xlu0 %971, %v163_v11   ;;  %191 = vperm.xlu1 %972, %v189_v12   ;;  %v215_v17 = vsel %vm213_vm3, 1, %v1103_v0  ;;  %v202_v18 = vsel %vm200_vm4, 1, %v1103_v0  ;;  %v51_v20 = vpack.c.bf16 %v50_v16, %v50_v16  ;;  %v989_v22 = vld [vmem:[#allocation5 + $0x20] sm:$0xff]   ;;  %v990_v23 = vld [vmem:[#allocation5 + $0x28] sm:$0xff]   ;;  %v991_v24 = vld [vmem:[#allocation5 + $0x30] sm:$0xff]   ;;  %s1106_s30 = smov [#allocation7]  }
  0x2e   :  { %883 = vmatprep.subr.bf16.mxu1 %v1104_v1  ;;  %v992_v25 = vld [vmem:[#allocation5 + $0x38] sm:$0xff]   ;;  %v794_v27 = vld [vmem:[%s1281_s4] ss:$0 sm:$0xff]  ;;  %v795_v28 = vld [vmem:[%s1281_s4 + $0x1] ss:$0 sm:$0xff]  ;;  %s775_s6 = sshll.u32 %s1106_s30, 4  ;;  %s776_s6 = int_to_ptr.vmem [resolvable:$true] %s775_s6 }
  0x2f   :  { %107 = vmatpush1.bf16.msra.mxu0 %v978_v5  ;;  %v796_v38 = vld [vmem:[%s1281_s4 + $0x10] ss:$0 sm:$0xff]  ;;  %v797_v40 = vld [vmem:[%s1281_s4 + $0x11] ss:$0 sm:$0xff]  ;;  %v798_v45 = vld [vmem:[%s1281_s4 + $0x12] ss:$0 sm:$0xff]  ;;  %p1074_p3 = scmp.lt.s32.totalorder %s776_s6, %s776_s6 }
  0x30   :  { %108 = vmatprep.subr.bf16.mxu0 %v979_v6  ;;  %884 = vmatpush3.bf16.msra.mxu1 %v986_v15  ;;  %v799_v49 = vld [vmem:[%s1281_s4 + $0x13] ss:$0 sm:$0xff]  ;;  %v800_v52 = vld [vmem:[%s1281_s4 + $0x14] ss:$0 sm:$0xff]  ;;  %v801_v58 = vld [vmem:[%s1281_s4 + $0x2] ss:$0 sm:$0xff] }
  0x31   :  { %178 = vperm.xlu0 %971, %v176_v14   ;;  %204 = vperm.xlu1 %972, %v202_v18   ;;  %v993_v0 = vld [vmem:[#allocation5 + $0x40] sm:$0xff]   ;;  %v994_v6 = vld [vmem:[#allocation5 + $0x48] sm:$0xff]   ;;  %v996_v8 = vld [vmem:[#allocation5 + $0x58] sm:$0xff]   ;;  %s1069_s7 = scalar_lea.vmem %s776_s6, 128 }
  0x32   :  { %885 = vmatprep.subr.bf16.mxu1 %v1104_v1  ;;  %v998_v10 = vld [vmem:[#allocation5 + $0x68] sm:$0xff]   ;;  %v999_v11 = vld [vmem:[#allocation5 + $0x70] sm:$0xff]   ;;  %v1000_v12 = vld [vmem:[#allocation5 + $0x78] sm:$0xff]   ;;  %p1070_p2 = scmp.ne.s32.totalorder %s776_s6, %s1069_s7  ;;  %p1075_p4 = scmp.lt.s32.totalorder %s1069_s7, %s1069_s7 }
  0x33   :  { %109 = vmatpush1.bf16.msra.mxu0 %v981_v7  ;;  %v995_v7 = vld [vmem:[#allocation5 + $0x50] sm:$0xff]  }
  0x34   :  { %110 = vmatprep.subr.bf16.mxu0 %v982_v9  ;;  %886 = vmatpush3.bf16.msra.mxu1 %v987_v19  ;;  %v997_v9 = vld [vmem:[#allocation5 + $0x60] sm:$0xff]   ;;  %v811_v19 = vld [vmem:[%s1281_s4 + $0x9] ss:$0 sm:$0xff]  ;;  %p1076_p5 = por %p1075_p4, %p1074_p3 }
  0x35   :  { %217 = vperm.xlu0 %971, %v215_v17   ;;  %887 = vmatprep.subr.bf16.mxu1 %v1104_v1  ;;  %v810_v17 = vld [vmem:[%s1281_s4 + $0x5] ss:$0 sm:$0xff] }
  0x36   :  { %p1077_p6 = pnand %p1076_p5, %p1070_p2 }
  0x37   :  { %111 = vmatpush1.bf16.msra.mxu0 %v984_v13 }
  0x38   :  { %901 = vmatprep.subr.bf16.mxu0 %v1104_v1  ;;  %888 = vmatpush3.bf16.msra.mxu1 %v988_v21 }
  0x39   :  { %889 = vmatprep.subr.bf16.mxu1 %v1104_v1 }
  0x3a   :  { %793 = vmatmul.mubr.msk.bf16.vlgmr.msra.gmra.mrb[0].mxu0 %vm100_vm5, %v51_v20 }
  0x3b   :  { %917 = vmatprep.mubr.msk.bf16.mxu0 %vm1105_vm6, %v1104_v1  ;;  %902 = vmatpush3.bf16.msra.mxu0 %v993_v0 }
  0x3c   :  { %890 = vmatpush3.bf16.msra.mxu1 %v989_v22  ;;  %903 = vmatprep.subr.bf16.mxu0 %v1104_v1 }
  0x3d   :  { %891 = vmatprep.subr.bf16.mxu1 %v1104_v1 }
  0x3f   :  { %904 = vmatpush3.bf16.msra.mxu0 %v994_v6  ;;  %v832_v6 = vld [vmem:[%s1281_s4 + $0x7] ss:$0 sm:$0xff] }
  0x40   :  { %892 = vmatpush3.bf16.msra.mxu1 %v990_v23  ;;  %905 = vmatprep.subr.bf16.mxu0 %v1104_v1 }
  0x41   :  { %893 = vmatprep.subr.bf16.mxu1 %v1104_v1 }
  0x43   :  { %906 = vmatpush3.bf16.msra.mxu0 %v995_v7 }
  0x44   :  { %894 = vmatpush3.bf16.msra.mxu1 %v991_v24  ;;  %907 = vmatprep.subr.bf16.mxu0 %v1104_v1 }
  0x45   :  { %895 = vmatprep.subr.bf16.mxu1 %v1104_v1 }
  0x47   :  { %908 = vmatpush3.bf16.msra.mxu0 %v996_v8  ;;  %v833_v8 = vld [vmem:[%s1281_s4 + $0xb] ss:$0 sm:$0xff] }
  0x48   :  { %896 = vmatpush3.bf16.msra.mxu1 %v992_v25  ;;  %909 = vmatprep.subr.bf16.mxu0 %v1104_v1  ;;  %v812_v25 = vld [vmem:[%s1281_s4 + $0x3] ss:$0 sm:$0xff] }
  0x49   :  { %921 = vmatprep.subr.bf16.mxu1 %v1104_v1 }
  0x4b   :  { %910 = vmatpush3.bf16.msra.mxu0 %v997_v9 }
  0x4c   :  { %911 = vmatprep.subr.bf16.mxu0 %v1104_v1 }
  0x4f   :  { %912 = vmatpush3.bf16.msra.mxu0 %v998_v10 }
  0x50   :  { %913 = vmatprep.subr.bf16.mxu0 %v1104_v1 }
  0x53   :  { %914 = vmatpush3.bf16.msra.mxu0 %v999_v11 }
  0x54   :  { %915 = vmatprep.subr.bf16.mxu0 %v1104_v1 }
  0x57   :  { %916 = vmatpush3.bf16.msra.mxu0 %v1000_v12 }
  0x58   :  { %941 = vmatprep.subr.bf16.mxu0 %v1104_v1 }
  0xac   :  { %v166_v26 = vpop.permute.xlu0 %165  ;;  %v192_v32 = vpop.permute.xlu1 %191 }
  0xad   :  { %vm167_vm7 = vcmp.eq.s32.totalorder %v166_v26, 1  ;;  %vm193_vm9 = vcmp.eq.s32.totalorder %v192_v32, 1 }
  0xae   :  { %v172_v42 = vsel %vm167_vm7, %v796_v38, 0.0  ;;  %v198_v50 = vsel %vm193_vm9, %v798_v45, 0.0  ;;  %v1004_v38 = vld [vmem:[#allocation5 + $0x98] sm:$0xff]  }
  0xb0   :  { %v179_v35 = vpop.permute.xlu0 %178  ;;  %v205_v43 = vpop.permute.xlu1 %204 }
  0xb1   :  { %vm180_vm8 = vcmp.eq.s32.totalorder %v179_v35, 1  ;;  %vm206_vm10 = vcmp.eq.s32.totalorder %v205_v43, 1 }
  0xb2   :  { %v185_v46 = vsel %vm180_vm8, %v797_v40, 0.0  ;;  %v211_v53 = vsel %vm206_vm10, %v799_v49, 0.0  ;;  %v1006_v40 = vld [vmem:[#allocation5 + $0xa8] sm:$0xff]  }
  0xb3   :  { %v822_v49 = vld [vmem:[%s1281_s4 + $0xa] ss:$0 sm:$0xff] }
  0xb4   :  { %v218_v47 = vpop.permute.xlu0 %217 }
  0xb5   :  { %vm219_vm11 = vcmp.eq.s32.totalorder %v218_v47, 1  ;;  %v821_v47 = vld [vmem:[%s1281_s4 + $0x6] ss:$0 sm:$0xff] }
  0xb6   :  { %v224_v55 = vsel %vm219_vm11, %v800_v52, 0.0 }
 0x10d   :  { %v138_v29 = vpop.f32.mrb[0].mxu0 }
 0x10e   :  { %v150_v30 = vadd.f32 %v794_v27, %v138_v29  ;;  %v140_v31 = vpop.f32.mrb[1].mxu0 }
 0x10f   :  { %v157_v33 = vadd.f32 %v795_v28, %v140_v31  ;;  %v142_v34 = vpop.f32.mrb[2].mxu0  ;;  %v1001_v31 = vld [vmem:[#allocation5 + $0x80] sm:$0xff]  }
 0x110   :  { %v151_v36 = vmax.f32 %v150_v30, 0.0  ;;  %v143_v37 = vpop.f32.mrb[3].mxu0 }
 0x111   :  { %v158_v39 = vmax.f32 %v157_v33, 0.0  ;;  %v1003_v37 = vld [vmem:[#allocation5 + $0x90] sm:$0xff]  }
 0x113   :  { %v159_v41 = vadd.f32 %v158_v39, %v151_v36  ;;  %v1002_v36 = vld [vmem:[#allocation5 + $0x88] sm:$0xff]   ;;  %v1005_v39 = vld [vmem:[#allocation5 + $0xa0] sm:$0xff]  }
 0x115   :  { %v173_v44 = vadd.f32 %v172_v42, %v159_v41  ;;  %v1007_v41 = vld [vmem:[#allocation5 + $0xb0] sm:$0xff]   ;;  %v1008_v42 = vld [vmem:[#allocation5 + $0xb8] sm:$0xff]  }
 0x117   :  { %v186_v48 = vadd.f32 %v185_v46, %v173_v44 }
 0x119   :  { %v199_v51 = vadd.f32 %v198_v50, %v186_v48 }
 0x11b   :  { %v212_v54 = vadd.f32 %v211_v53, %v199_v51 }
 0x11d   :  { %v225_v56 = vadd.f32 %v224_v55, %v212_v54  ;;  %v823_v55 = vld [vmem:[%s1281_s4 + $0x4] ss:$0 sm:$0xff] }
 0x11f   :  { %v226_v57 = vpack.c.bf16 %v225_v56, %v225_v56 }
 0x121   :  { %898 = vmatmul.mubr.bf16.vlgmr.msra.gmra.mrb[0].mxu1 %v226_v57 }
 0x122   :  { %937 = vmatprep.mubr.msk.bf16.mxu1 %vm1105_vm6, %v1104_v1  ;;  %922 = vmatpush3.bf16.msra.mxu1 %v1001_v31  ;;  %v835_v31 = vld [vmem:[%s1281_s4 + $0xc] ss:$0 sm:$0xff] }
 0x123   :  { %923 = vmatprep.subr.bf16.mxu1 %v1104_v1 }
 0x126   :  { %924 = vmatpush3.bf16.msra.mxu1 %v1002_v36 }
 0x127   :  { %925 = vmatprep.subr.bf16.mxu1 %v1104_v1 }
 0x12a   :  { %926 = vmatpush3.bf16.msra.mxu1 %v1003_v37 }
 0x12b   :  { %927 = vmatprep.subr.bf16.mxu1 %v1104_v1 }
 0x12e   :  { %928 = vmatpush3.bf16.msra.mxu1 %v1004_v38 }
 0x12f   :  { %929 = vmatprep.subr.bf16.mxu1 %v1104_v1 }
 0x132   :  { %930 = vmatpush3.bf16.msra.mxu1 %v1005_v39 }
 0x133   :  { %931 = vmatprep.subr.bf16.mxu1 %v1104_v1 }
 0x136   :  { %932 = vmatpush3.bf16.msra.mxu1 %v1006_v40 }
 0x137   :  { %933 = vmatprep.subr.bf16.mxu1 %v1104_v1 }
 0x13a   :  { %934 = vmatpush3.bf16.msra.mxu1 %v1007_v41 }
 0x13b   :  { %935 = vmatprep.subr.bf16.mxu1 %v1104_v1 }
 0x13e   :  { %936 = vmatpush3.bf16.msra.mxu1 %v1008_v42 }
 0x1f4   :  { %v330_v59 = vpop.f32.mrb[0].mxu1 }
 0x1f5   :  { %v331_v60 = vadd.f32 %v801_v58, %v330_v59  ;;  %v899_v61 = vpop.f32.mrb[1].mxu1 }
 0x1f6   :  { %v333_v62 = vpop.f32.mrb[2].mxu1 }
 0x1f7   :  { %338 = vadd.xlane.f32.xlu1 %v331_v60  ;;  %v900_v63 = vpop.f32.mrb[3].mxu1 }
 0x284   :  { %v339_v2 = vpop.xlane.xlu1 %338 }
 0x285   :  { %v341_v3 = vmul.f32 0.0078125, %v339_v2 }
 0x287   :  { %v342_v4 = vsub.f32 %v331_v60, %v341_v3 }
 0x289   :  { %v343_v5 = vmul.f32 %v342_v4, %v342_v4 }
 0x28b   :  { %344 = vadd.xlane.f32.xlu0 %v343_v5 }
 0x318   :  { %v345_v13 = vpop.xlane.xlu0 %344 }
 0x319   :  { %v346_v14 = vmul.f32 0.0078125, %v345_v13  ;;  %v1009_v13 = vld [vmem:[#allocation5 + $0xc0] sm:$0xff]  }
 0x31b   :  { %v347_v15 = vadd.f32 1e-05, %v346_v14  ;;  %v1010_v14 = vld [vmem:[#allocation5 + $0xc8] sm:$0xff]  }
 0x31d   :  { %1017 = vrsqrt.f32 %v347_v15 }
 0x327   :  { %v1018_v16 = vpop.eup %1017 }
 0x328   :  { %v349_v18 = vmul.f32 %v1018_v16, %v342_v4 }
 0x32a   :  { %v354_v20 = vmul.f32 %v810_v17, %v349_v18 }
 0x32c   :  { %v359_v21 = vadd.f32 %v811_v19, %v354_v20  ;;  %v1011_v19 = vld [vmem:[#allocation5 + $0xd0] sm:$0xff]   ;;  %v1012_v20 = vld [vmem:[#allocation5 + $0xd8] sm:$0xff]  }
 0x32e   :  { %v360_v22 = vmax.f32 %v359_v21, 0.0  ;;  %v1013_v21 = vld [vmem:[#allocation5 + $0xe0] sm:$0xff]  }
 0x330   :  { %v361_v23 = vadd.f32 %v360_v22, %v225_v56  ;;  %v1014_v22 = vld [vmem:[#allocation5 + $0xe8] sm:$0xff]  }
 0x332   :  { %v362_v24 = vpack.c.bf16 %v361_v23, %v361_v23 }
 0x334   :  { %918 = vmatmul.mubr.bf16.vlgmr.msra.gmra.mrb[4].mxu0 %v362_v24  ;;  %v1016_v24 = vld [vmem:[#allocation5 + $0xf8] sm:$0xff]  }
 0x335   :  { %957 = vmatprep.mubr.msk.bf16.mxu0 %vm1105_vm6, %v1104_v1  ;;  %942 = vmatpush3.bf16.msra.mxu0 %v1009_v13 }
 0x336   :  { %943 = vmatprep.subr.bf16.mxu0 %v1104_v1 }
 0x339   :  { %944 = vmatpush3.bf16.msra.mxu0 %v1010_v14 }
 0x33a   :  { %945 = vmatprep.subr.bf16.mxu0 %v1104_v1 }
 0x33d   :  { %946 = vmatpush3.bf16.msra.mxu0 %v1011_v19 }
 0x33e   :  { %947 = vmatprep.subr.bf16.mxu0 %v1104_v1 }
 0x341   :  { %948 = vmatpush3.bf16.msra.mxu0 %v1012_v20 }
 0x342   :  { %949 = vmatprep.subr.bf16.mxu0 %v1104_v1 }
 0x345   :  { %950 = vmatpush3.bf16.msra.mxu0 %v1013_v21 }
 0x346   :  { %951 = vmatprep.subr.bf16.mxu0 %v1104_v1 }
 0x349   :  { %952 = vmatpush3.bf16.msra.mxu0 %v1014_v22 }
 0x34a   :  { %953 = vmatprep.subr.bf16.mxu0 %v1104_v1 }
 0x407   :  { %v467_v26 = vpop.f32.mrb[4].mxu0 }
 0x408   :  { %v468_v27 = vadd.f32 %v812_v25, %v467_v26  ;;  %v919_v28 = vpop.f32.mrb[5].mxu0 }
 0x409   :  { %v470_v29 = vpop.f32.mrb[6].mxu0 }
 0x40a   :  { %475 = vadd.xlane.f32.xlu0 %v468_v27  ;;  %v920_v30 = vpop.f32.mrb[7].mxu0  ;;  %v834_v29 = vld [vmem:[%s1281_s4 + $0x8] ss:$0 sm:$0xff] }
 0x497   :  { %v476_v32 = vpop.xlane.xlu0 %475 }
 0x498   :  { %v477_v33 = vmul.f32 0.0078125, %v476_v32 }
 0x49a   :  { %v478_v34 = vsub.f32 %v468_v27, %v477_v33 }
 0x49c   :  { %v479_v35 = vmul.f32 %v478_v34, %v478_v34 }
 0x49e   :  { %480 = vadd.xlane.f32.xlu1 %v479_v35 }
 0x52b   :  { %v481_v43 = vpop.xlane.xlu1 %480 }
 0x52c   :  { %v482_v44 = vmul.f32 0.0078125, %v481_v43 }
 0x52e   :  { %v483_v45 = vadd.f32 1e-05, %v482_v44 }
 0x530   :  { %1019 = vrsqrt.f32 %v483_v45 }
 0x53a   :  { %v1020_v46 = vpop.eup %1019 }
 0x53b   :  { %v485_v48 = vmul.f32 %v1020_v46, %v478_v34 }
 0x53d   :  { %v490_v50 = vmul.f32 %v821_v47, %v485_v48 }
 0x53f   :  { %v495_v51 = vadd.f32 %v822_v49, %v490_v50 }
 0x541   :  { %v496_v52 = vmax.f32 %v495_v51, 0.0 }
 0x543   :  { %v497_v53 = vadd.f32 %v496_v52, %v361_v23  ;;  %v1015_v23 = vld [vmem:[#allocation5 + $0xf0] sm:$0xff]  }
 0x544   :  { %954 = vmatpush3.bf16.msra.mxu0 %v1015_v23 }
 0x545   :  { %v498_v54 = vpack.c.bf16 %v497_v53, %v497_v53  ;;  %955 = vmatprep.subr.bf16.mxu0 %v1104_v1  ;;  %v836_v1 = vld [vmem:[%s1281_s4 + $0xd] ss:$0 sm:$0xff] }
 0x547   :  { %938 = vmatmul.mubr.bf16.vlgmr.msra.gmra.mrb[4].mxu1 %v498_v54 }
 0x548   :  { %956 = vmatpush3.bf16.msra.mxu0 %v1016_v24 }
 0x61a   :  { %v603_v56 = vpop.f32.mrb[4].mxu1 }
 0x61b   :  { %v604_v57 = vadd.f32 %v823_v55, %v603_v56  ;;  %v939_v58 = vpop.f32.mrb[5].mxu1 }
 0x61c   :  { %v606_v59 = vpop.f32.mrb[6].mxu1 }
 0x61d   :  { %611 = vadd.xlane.f32.xlu0 %v604_v57  ;;  %v940_v60 = vpop.f32.mrb[7].mxu1 }
 0x6aa   :  { %v612_v61 = vpop.xlane.xlu0 %611 }
 0x6ab   :  { %v613_v62 = vmul.f32 0.0078125, %v612_v61 }
 0x6ad   :  { %v614_v63 = vsub.f32 %v604_v57, %v613_v62 }
 0x6af   :  { %v615_v0 = vmul.f32 %v614_v63, %v614_v63 }
 0x6b1   :  { %616 = vadd.xlane.f32.xlu1 %v615_v0 }
 0x73e   :  { %v617_v2 = vpop.xlane.xlu1 %616 }
 0x73f   :  { %v618_v3 = vmul.f32 0.0078125, %v617_v2 }
 0x741   :  { %v619_v4 = vadd.f32 1e-05, %v618_v3 }
 0x743   :  { %1021 = vrsqrt.f32 %v619_v4 }
 0x74d   :  { %v1022_v5 = vpop.eup %1021 }
 0x74e   :  { %v621_v7 = vmul.f32 %v1022_v5, %v614_v63 }
 0x750   :  { %v626_v9 = vmul.f32 %v832_v6, %v621_v7 }
 0x752   :  { %v631_v10 = vadd.f32 %v833_v8, %v626_v9 }
 0x754   :  { %v632_v11 = vmax.f32 %v631_v10, 0.0 }
 0x756   :  { %v633_v12 = vadd.f32 %v632_v11, %v497_v53 }
 0x758   :  { %636 = vadd.xlane.f32.xlu0 %v633_v12 }
 0x7e5   :  { %v637_v15 = vpop.xlane.xlu0 %636 }
 0x7e6   :  { %v638_v16 = vmul.f32 0.0078125, %v637_v15 }
 0x7e8   :  { %v639_v17 = vsub.f32 %v633_v12, %v638_v16 }
 0x7ea   :  { %v640_v18 = vmul.f32 %v639_v17, %v639_v17 }
 0x7ec   :  { %641 = vadd.xlane.f32.xlu1 %v640_v18 }
 0x879   :  { %v642_v25 = vpop.xlane.xlu1 %641 }
 0x87a   :  { %v643_v26 = vmul.f32 0.0078125, %v642_v25 }
 0x87c   :  { %v644_v27 = vadd.f32 1e-05, %v643_v26 }
 0x87e   :  { %1023 = vrsqrt.f32 %v644_v27 }
 0x888   :  { %v1024_v28 = vpop.eup %1023 }
 0x889   :  { %v646_v30 = vmul.f32 %v1024_v28, %v639_v17 }
 0x88b   :  { %v651_v32 = vmul.f32 %v834_v29, %v646_v30 }
 0x88d   :  { %v656_v33 = vadd.f32 %v835_v31, %v651_v32 }
 0x88f   :  { %v657_v34 = vpack.c.bf16 %v656_v33, %v656_v33 }
 0x891   :  { %958 = vmatmul.mubr.bf16.vlgmr.msra.gmra.mrb[8].mxu0 %v657_v34 }
 0x964   :  { %v762_v35 = vpop.f32.mrb[8].mxu0 }
 0x965   :  { %v763_v36 = vadd.f32 %v836_v1, %v762_v35  ;;  %v959_v37 = vpop.f32.mrb[9].mxu0 }
 0x966   :  { %v765_v38 = vpop.f32.mrb[10].mxu0 }
 0x967   :  { %768 = vst [vmem:[#allocation7] sm:$0xff] %v763_v36  ;;  %v960_v39 = vpop.f32.mrb[11].mxu0 }
 0x968   :  { %1080 = shalt.err (!%p1077_p6)
}
 0x969   :  { %s1081_s4 = scalar_lea.hbm %s1282_s5, 128 }
 0x96a   :  { %p1082_p7 = scmp.ne.s32.totalorder %s1282_s5, %s1081_s4  ;;  %p1085_p8 = scmp.lt.u32.totalorder %s1081_s4, %s1282_s5 }
 0x96c   :  { %p1087_p9 = pnand %p1085_p8, %p1082_p7 }
 0x96e   :  { %1090 = shalt.err (!%p1087_p9)
}
 0x96f   :  { %778 = dma.vmem_to_hbm [thread:$0]  %s776_s6, 128, %s1282_s5, [#allocation4]  }
 0x970   :  { %1095 = dma.done.wait [#allocation4], 128  }
 0x971   :  { %1096 = vsyncadd [#allocation4], 4294967168 }
 0x972   :  { %782 = vsyncpa [#allocation3], 1 }
 0x973   :  { %783 = vsyncpa [#allocation6], 1 }
 0x974   :  { %784 = vsyncpa [#allocation4], 1 }

</bundles_post_ra>
